<compile_context>
chip_gen: v7x
topology: tpu7x:2x2x1
jax: 0.10.0
libtpu: 0.0.40
codegen_flags: <defaults>
</compile_context>

<pallas_src>
import numpy as np
import jax
import jax.numpy as jnp
from jax.experimental import pallas as pl
from jax.experimental.pallas import tpu as pltpu


# ----------------------------------------------------------------------------
# Pallas kernel: fused 2-layer GraphSAGE forward (all operands VMEM-resident)
# ----------------------------------------------------------------------------
def sage_kernel(a_ref, x_ref, w1s_ref, w1n_ref, b1_ref,
                w2s_ref, w2n_ref, b2_ref, out_ref):
    a = a_ref[...]                                   # bf16 [Np, Np]  row-normalized adjacency
    x_bf = x_ref[...].astype(jnp.bfloat16)           # bf16 [Np, Fp]

    # ---- layer 1: SAGEConv(in -> hid, mean) + ReLU --------------------------
    h_neigh1 = jnp.dot(a, x_bf, preferred_element_type=jnp.float32)        # [Np, Fp] f32
    h1 = (jnp.dot(x_bf, w1s_ref[...], preferred_element_type=jnp.float32)
          + jnp.dot(h_neigh1.astype(jnp.bfloat16), w1n_ref[...],
                    preferred_element_type=jnp.float32)
          + b1_ref[...])                                                    # [Np, Hp] f32
    h1 = jnp.maximum(h1, 0.0)                                               # ReLU (f32 epilogue)
    h1_bf = h1.astype(jnp.bfloat16)

    # ---- layer 2: SAGEConv(hid -> out, mean) + sigmoid ----------------------
    # Reassociated: project to out_feats first, then aggregate (A @ (h1 @ W2n)).
    proj = jnp.dot(h1_bf, w2n_ref[...], preferred_element_type=jnp.float32)  # [Np, Op] f32
    h2 = (jnp.dot(h1_bf, w2s_ref[...], preferred_element_type=jnp.float32)
          + jnp.dot(a, proj.astype(jnp.bfloat16), preferred_element_type=jnp.float32)
          + b2_ref[...])                                                     # [Np, Op] f32
    out_ref[...] = jax.nn.sigmoid(h2)                                        # f32 epilogue


# ----------------------------------------------------------------------------
# Wrapper: zero-pad to lane/MXU-friendly shapes, run the fused kernel, slice back
# ----------------------------------------------------------------------------
def _round_up(d, m=128):
    return ((d + m - 1) // m) * m


def _pad2d(arr, rows, cols):
    r, c = arr.shape
    return jnp.pad(arr, ((0, rows - r), (0, cols - c)))


def sage_forward(a_norm, x, w1_self, w1_neigh, b1, w2_self, w2_neigh, b2):
    N, Fin = x.shape
    H = w1_self.shape[1]
    O = w2_self.shape[1]
    Np, Fp, Hp, Op = _round_up(N), _round_up(Fin), _round_up(H), _round_up(O)

    # Zero-pad.  A's extra columns are zero (not renormalized) -> mean over the
    # real neighbors is unchanged; padded rows only affect padded outputs.
    a_p   = _pad2d(a_norm, Np, Np).astype(jnp.bfloat16)     # halve A's VMEM footprint
    x_p   = _pad2d(x, Np, Fp).astype(jnp.float32)
    w1s_p = _pad2d(w1_self, Fp, Hp).astype(jnp.bfloat16)
    w1n_p = _pad2d(w1_neigh, Fp, Hp).astype(jnp.bfloat16)
    b1_p  = _pad2d(b1, 1, Hp).astype(jnp.float32)
    w2s_p = _pad2d(w2_self, Hp, Op).astype(jnp.bfloat16)
    w2n_p = _pad2d(w2_neigh, Hp, Op).astype(jnp.bfloat16)
    b2_p  = _pad2d(b2, 1, Op).astype(jnp.float32)

    vmem_spec = pl.BlockSpec(memory_space=pltpu.MemorySpace.VMEM)

    flops = 2 * (Np * Np * Fp          # A @ x
                 + 2 * Np * Fp * Hp    # x @ W1s, h_neigh1 @ W1n
                 + 2 * Np * Hp * Op    # h1 @ W2n, h1 @ W2s
                 + Np * Np * Op)       # A @ proj
    bytes_accessed = (a_p.size * 2 + x_p.size * 4
                      + (w1s_p.size + w1n_p.size + w2s_p.size + w2n_p.size) * 2
                      + (b1_p.size + b2_p.size) * 4
                      + Np * Op * 4)
    cost = pl.CostEstimate(flops=flops, transcendentals=Np * Op,
                           bytes_accessed=bytes_accessed)

    out_p = pl.pallas_call(
        sage_kernel,
        out_shape=jax.ShapeDtypeStruct((Np, Op), jnp.float32),
        in_specs=[vmem_spec] * 8,
        out_specs=vmem_spec,
        cost_estimate=cost,
    )(a_p, x_p, w1s_p, w1n_p, b1_p, w2s_p, w2n_p, b2_p)

    return out_p[:N, :O]


# ----------------------------------------------------------------------------
# Pure-JAX f32 reference (ground-truth semantics for the correctness check)
# ----------------------------------------------------------------------------
def sage_ref(a_norm, x, w1_self, w1_neigh, b1, w2_self, w2_neigh, b2):
    h1 = jnp.maximum(x @ w1_self + (a_norm @ x) @ w1_neigh + b1, 0.0)
    h2 = h1 @ w2_self + (a_norm @ h1) @ w2_neigh + b2
    return jax.nn.sigmoid(h2)


# ----------------------------------------------------------------------------
# Graph construction (deterministic, synthetic 'karate-club-like' graph)
# ----------------------------------------------------------------------------
def build_graph_adjacency(num_nodes):
    """Row-normalized dense adjacency (rows = destination, cols = source),
    matching DGL's 'mean' aggregator: mean over in-neighbors, 0 if none."""
    src, dst = [], []
    for i in range(num_nodes):
        src += [i, (i + 1) % num_nodes]
        dst += [(i + 1) % num_nodes, i]
        if i % 3 == 0 and i != 0:
            src.append(i)
            dst.append(0)
    adj = np.zeros((num_nodes, num_nodes), dtype=np.float32)
    for s, d in zip(src, dst):
        adj[d, s] = 1.0
    deg = adj.sum(axis=1, keepdims=True)
    a_norm = np.where(deg > 0, adj / np.maximum(deg, 1.0), 0.0).astype(np.float32)
    return jnp.asarray(a_norm)


if __name__ == "__main__":
    num_nodes = 32
    in_feats, hid_feats, out_feats = 16, 32, 8

    key = jax.random.PRNGKey(0)
    k_x, k_w1s, k_w1n, k_b1, k_w2s, k_w2n, k_b2 = jax.random.split(key, 7)

    x = jax.random.normal(k_x, (num_nodes, in_feats), dtype=jnp.float32)
    a_norm = build_graph_adjacency(num_nodes)

    w1_self = jax.random.normal(k_w1s, (in_feats, hid_feats), jnp.float32) * 0.1
    w1_neigh = jax.random.normal(k_w1n, (in_feats, hid_feats), jnp.float32) * 0.1
    b1 = jax.random.normal(k_b1, (1, hid_feats), jnp.float32) * 0.05
    w2_self = jax.random.normal(k_w2s, (hid_feats, out_feats), jnp.float32) * 0.1
    w2_neigh = jax.random.normal(k_w2n, (hid_feats, out_feats), jnp.float32) * 0.1
    b2 = jax.random.normal(k_b2, (1, out_feats), jnp.float32) * 0.05

    out = sage_forward(a_norm, x, w1_self, w1_neigh, b1, w2_self, w2_neigh, b2)
    out = jax.block_until_ready(out)

    ref = sage_ref(a_norm, x, w1_self, w1_neigh, b1, w2_self, w2_neigh, b2)
    # bf16 MXU operands with f32 accumulation -> loosen tolerance vs. the f32 reference.
    np.testing.assert_allclose(np.asarray(out), np.asarray(ref), rtol=2e-2, atol=2e-2)

    assert out.shape == (num_nodes, out_feats)
    print("KERNEL_OK")
</pallas_src>

<mosaic_0001>
module attributes {stable_mosaic.version = 11 : i64} {
  func.func @sage_kernel(%arg0: memref<128x128xbf16, #tpu.memory_space<vmem>>, %arg1: memref<128x128xf32, #tpu.memory_space<vmem>>, %arg2: memref<128x128xbf16, #tpu.memory_space<vmem>>, %arg3: memref<128x128xbf16, #tpu.memory_space<vmem>>, %arg4: memref<1x128xf32, #tpu.memory_space<vmem>>, %arg5: memref<128x128xbf16, #tpu.memory_space<vmem>>, %arg6: memref<128x128xbf16, #tpu.memory_space<vmem>>, %arg7: memref<1x128xf32, #tpu.memory_space<vmem>>, %arg8: memref<128x128xf32, #tpu.memory_space<vmem>>) attributes {dimension_semantics = [], scalar_prefetch = 0 : i64, scratch_operands = 0 : i64, tpu.core_type = #tpu.core_type<tc>} {
    %c0 = arith.constant 0 : index
    %c0_0 = arith.constant 0 : index
    %0 = vector.load %arg0[%c0, %c0_0] : memref<128x128xbf16, #tpu.memory_space<vmem>>, vector<128x128xbf16>
    %c0_1 = arith.constant 0 : index
    %c0_2 = arith.constant 0 : index
    %1 = vector.load %arg1[%c0_1, %c0_2] : memref<128x128xf32, #tpu.memory_space<vmem>>, vector<128x128xf32>
    %2 = arith.truncf %1 : vector<128x128xf32> to vector<128x128xbf16>
    %cst = arith.constant dense<0.000000e+00> : vector<128x128xf32>
    %3 = tpu.matmul %0, %2, %cst {dimension_numbers = #tpu.dot_dimension_numbers<[1], [0], [0], [1], [0, 0, 1, 1], [], []>} : vector<128x128xbf16>, vector<128x128xbf16>, vector<128x128xf32> -> vector<128x128xf32>
    %c0_3 = arith.constant 0 : index
    %c0_4 = arith.constant 0 : index
    %4 = vector.load %arg2[%c0_3, %c0_4] : memref<128x128xbf16, #tpu.memory_space<vmem>>, vector<128x128xbf16>
    %cst_5 = arith.constant dense<0.000000e+00> : vector<128x128xf32>
    %5 = tpu.matmul %2, %4, %cst_5 {dimension_numbers = #tpu.dot_dimension_numbers<[1], [0], [0], [1], [0, 0, 1, 1], [], []>} : vector<128x128xbf16>, vector<128x128xbf16>, vector<128x128xf32> -> vector<128x128xf32>
    %6 = arith.truncf %3 : vector<128x128xf32> to vector<128x128xbf16>
    %c0_6 = arith.constant 0 : index
    %c0_7 = arith.constant 0 : index
    %7 = vector.load %arg3[%c0_6, %c0_7] : memref<128x128xbf16, #tpu.memory_space<vmem>>, vector<128x128xbf16>
    %cst_8 = arith.constant dense<0.000000e+00> : vector<128x128xf32>
    %8 = tpu.matmul %6, %7, %cst_8 {dimension_numbers = #tpu.dot_dimension_numbers<[1], [0], [0], [1], [0, 0, 1, 1], [], []>} : vector<128x128xbf16>, vector<128x128xbf16>, vector<128x128xf32> -> vector<128x128xf32>
    %9 = arith.addf %5, %8 : vector<128x128xf32>
    %c0_9 = arith.constant 0 : index
    %c0_10 = arith.constant 0 : index
    %10 = vector.load %arg4[%c0_9, %c0_10] : memref<1x128xf32, #tpu.memory_space<vmem>>, vector<1x128xf32>
    %11 = vector.broadcast %10 : vector<1x128xf32> to vector<128x128xf32>
    %12 = arith.addf %9, %11 : vector<128x128xf32>
    %cst_11 = arith.constant 0.000000e+00 : f32
    %13 = vector.broadcast %cst_11 : f32 to vector<128x128xf32>
    %14 = arith.maximumf %12, %13 : vector<128x128xf32>
    %15 = arith.truncf %14 : vector<128x128xf32> to vector<128x128xbf16>
    %c0_12 = arith.constant 0 : index
    %c0_13 = arith.constant 0 : index
    %16 = vector.load %arg6[%c0_12, %c0_13] : memref<128x128xbf16, #tpu.memory_space<vmem>>, vector<128x128xbf16>
    %cst_14 = arith.constant dense<0.000000e+00> : vector<128x128xf32>
    %17 = tpu.matmul %15, %16, %cst_14 {dimension_numbers = #tpu.dot_dimension_numbers<[1], [0], [0], [1], [0, 0, 1, 1], [], []>} : vector<128x128xbf16>, vector<128x128xbf16>, vector<128x128xf32> -> vector<128x128xf32>
    %c0_15 = arith.constant 0 : index
    %c0_16 = arith.constant 0 : index
    %18 = vector.load %arg5[%c0_15, %c0_16] : memref<128x128xbf16, #tpu.memory_space<vmem>>, vector<128x128xbf16>
    %cst_17 = arith.constant dense<0.000000e+00> : vector<128x128xf32>
    %19 = tpu.matmul %15, %18, %cst_17 {dimension_numbers = #tpu.dot_dimension_numbers<[1], [0], [0], [1], [0, 0, 1, 1], [], []>} : vector<128x128xbf16>, vector<128x128xbf16>, vector<128x128xf32> -> vector<128x128xf32>
    %20 = arith.truncf %17 : vector<128x128xf32> to vector<128x128xbf16>
    %cst_18 = arith.constant dense<0.000000e+00> : vector<128x128xf32>
    %21 = tpu.matmul %0, %20, %cst_18 {dimension_numbers = #tpu.dot_dimension_numbers<[1], [0], [0], [1], [0, 0, 1, 1], [], []>} : vector<128x128xbf16>, vector<128x128xbf16>, vector<128x128xf32> -> vector<128x128xf32>
    %22 = arith.addf %19, %21 : vector<128x128xf32>
    %c0_19 = arith.constant 0 : index
    %c0_20 = arith.constant 0 : index
    %23 = vector.load %arg7[%c0_19, %c0_20] : memref<1x128xf32, #tpu.memory_space<vmem>>, vector<1x128xf32>
    %24 = vector.broadcast %23 : vector<1x128xf32> to vector<128x128xf32>
    %25 = arith.addf %22, %24 : vector<128x128xf32>
    %26 = arith.negf %25 : vector<128x128xf32>
    %27 = math.exp %26 : vector<128x128xf32>
    %cst_21 = arith.constant 1.000000e+00 : f32
    %28 = vector.broadcast %cst_21 : f32 to vector<128x128xf32>
    %29 = arith.addf %28, %27 : vector<128x128xf32>
    %30 = arith.divf %28, %29 : vector<128x128xf32>
    %c0_22 = arith.constant 0 : index
    %c0_23 = arith.constant 0 : index
    %31 = vector.load %arg8[%c0_22, %c0_23] : memref<128x128xf32, #tpu.memory_space<vmem>>, vector<128x128xf32>
    tpu.vector_store %arg8[%c0_22, %c0_23], %30 {strides = array<i32>} : memref<128x128xf32, #tpu.memory_space<vmem>>, vector<128x128xf32>,
    return
  }
}

</mosaic_0001>

<bundles_post_ra>
// kernel: tpu_custom_call.1
= control target key start
LH: loop header
LB: loop body
LE: loop exit
PB: predicated region body
PF: predicated region fallthrough
CT: control target
= control target key end

     0   :  { %13 = vsyncpa [#allocation3], 0  ;;  %s2203_s0 = inlined_call_operand.hbm [shape: bf16[128,128], index: 0, kind: input, shape index: {}]   ;;  %s2204_s1 = inlined_call_operand.hbm [shape: f32[128,128], index: 1, kind: input, shape index: {}]   ;;  %s2205_s2 = inlined_call_operand.hbm [shape: bf16[128,128], index: 2, kind: input, shape index: {}]   ;;  %s2206_s3 = inlined_call_operand.hbm [shape: bf16[128,128], index: 3, kind: input, shape index: {}]   ;;  %s2207_s4 = inlined_call_operand.vmem [shape: f32[1,128], index: 4, kind: input, shape index: {}]   ;;  %s2208_s5 = inlined_call_operand.hbm [shape: bf16[128,128], index: 5, kind: input, shape index: {}]   ;;  %s2209_s6 = inlined_call_operand.hbm [shape: bf16[128,128], index: 6, kind: input, shape index: {}]   ;;  %s2210_s7 = inlined_call_operand.vmem [shape: f32[1,128], index: 7, kind: input, shape index: {}]   ;;  %s2211_s8 = inlined_call_operand.hbm [shape: f32[128,128], index: 8, kind: output, shape index: {}]  }
   0x1   :  { %14 = vsyncpa [#allocation6], 0 }
   0x2   :  { %15 = vsyncpa [#allocation9], 0 }
   0x3   :  { %16 = vsyncpa [#allocation12], 0 }
   0x4   :  { %17 = vsyncpa [#allocation4], 0  ;;  %s1914_s27 = smov [#allocation5]   ;;  %s1750_s9 = scalar_lea.hbm %s2204_s1, 2048 }
   0x5   :  { %s35_s28 = sshll.u32 %s1914_s27, 4  ;;  %p1751_p0 = scmp.ne.s32.totalorder %s2204_s1, %s1750_s9  ;;  %s36_s28 = int_to_ptr.vmem [resolvable:$true] %s35_s28 }
   0x6   :  { %p1754_p1 = scmp.lt.u32.totalorder %s1750_s9, %s2204_s1 }
   0x8   :  { %p1756_p2 = pnand %p1754_p1, %p1751_p0 }
   0xa   :  { %1759 = shalt.err (!%p1756_p2)
}
   0xb   :  { %s1760_s14 = scalar_lea.vmem %s36_s28, 2048  ;;  %p1765_p4 = scmp.lt.s32.totalorder %s36_s28, %s36_s28 }
   0xc   :  { %p1761_p3 = scmp.ne.s32.totalorder %s36_s28, %s1760_s14  ;;  %p1766_p5 = scmp.lt.s32.totalorder %s1760_s14, %s1760_s14 }
   0xe   :  { %p1767_p6 = por %p1766_p5, %p1765_p4 }
  0x10   :  { %p1768_p7 = pnand %p1767_p6, %p1761_p3 }
  0x12   :  { %1771 = shalt.err (!%p1768_p7)
}
  0x13   :  { %s1915_s15 = smov 128   ;;  %s1916_s16 = smov 8  }
  0x14   :  { %41 = dma.hbm_to_vmem [thread:$0]  %s2204_s1, 2048, %s36_s28, [#allocation6], %s1915_s15, %s1915_s15, %s1916_s16  }
  0x15   :  { %s1917_s19 = smov [#allocation8]   ;;  %s1918_s21 = smov [#allocation2]  }
  0x16   :  { %s59_s20 = sshll.u32 %s1917_s19, 4  ;;  %s23_s22 = sshll.u32 %s1918_s21, 4  ;;  %s60_s20 = int_to_ptr.vmem [resolvable:$true] %s59_s20  ;;  %s24_s22 = int_to_ptr.vmem [resolvable:$true] %s23_s22 }
  0x17   :  { %s1772_s25 = scalar_lea.hbm %s2206_s3, 1024 }
  0x18   :  { %p1773_p8 = scmp.ne.s32.totalorder %s2206_s3, %s1772_s25  ;;  %p1776_p9 = scmp.lt.u32.totalorder %s1772_s25, %s2206_s3 }
  0x1a   :  { %p1778_p10 = pnand %p1776_p9, %p1773_p8 }
  0x1c   :  { %1781 = shalt.err (!%p1778_p10)
}
  0x1d   :  { %s1782_s1 = scalar_lea.vmem %s60_s20, 1024  ;;  %p1787_p12 = scmp.lt.s32.totalorder %s60_s20, %s60_s20 }
  0x1e   :  { %p1783_p11 = scmp.ne.s32.totalorder %s60_s20, %s1782_s1  ;;  %p1788_p13 = scmp.lt.s32.totalorder %s1782_s1, %s1782_s1 }
  0x20   :  { %p1789_p0 = por %p1788_p13, %p1787_p12 }
  0x22   :  { %p1790_p1 = pnand %p1789_p0, %p1783_p11 }
  0x24   :  { %1793 = shalt.err (!%p1790_p1)
}
  0x25   :  { %s1919_s28 = smov 64   ;;  %s1920_s9 = smov 4  }
  0x26   :  { %65 = dma.hbm_to_vmem [thread:$0]  %s2206_s3, 1024, %s60_s20, [#allocation9], %s1919_s28, %s1919_s28, %s1920_s9  }
  0x27   :  { %s1794_s14 = scalar_lea.hbm %s2203_s0, 1024 }
  0x28   :  { %p1795_p2 = scmp.ne.s32.totalorder %s2203_s0, %s1794_s14  ;;  %p1798_p3 = scmp.lt.u32.totalorder %s1794_s14, %s2203_s0 }
  0x2a   :  { %p1800_p4 = pnand %p1798_p3, %p1795_p2 }
  0x2c   :  { %1803 = shalt.err (!%p1800_p4)
}
  0x2d   :  { %s1804_s23 = scalar_lea.vmem %s24_s22, 1024  ;;  %p1809_p6 = scmp.lt.s32.totalorder %s24_s22, %s24_s22 }
  0x2e   :  { %p1805_p5 = scmp.ne.s32.totalorder %s24_s22, %s1804_s23  ;;  %p1810_p7 = scmp.lt.s32.totalorder %s1804_s23, %s1804_s23 }
  0x30   :  { %p1811_p8 = por %p1810_p7, %p1809_p6 }
  0x32   :  { %p1812_p9 = pnand %p1811_p8, %p1805_p5 }
  0x34   :  { %1815 = shalt.err (!%p1812_p9)
}
  0x35   :  { %29 = dma.hbm_to_vmem [thread:$0]  %s2203_s0, 1024, %s24_s22, [#allocation3], %s1919_s28, %s1919_s28, %s1920_s9  }
  0x36   :  { %s1921_s24 = smov [#allocation7]   ;;  %s1922_s26 = smov [#allocation10]  }
  0x37   :  { %s47_s25 = sshll.u32 %s1921_s24, 4  ;;  %s73_s27 = sshll.u32 %s1922_s26, 4  ;;  %s48_s25 = int_to_ptr.vmem [resolvable:$true] %s47_s25  ;;  %s74_s27 = int_to_ptr.vmem [resolvable:$true] %s73_s27 }
  0x38   :  { %s1816_s1 = scalar_lea.hbm %s2205_s2, 1024 }
  0x39   :  { %p1817_p10 = scmp.ne.s32.totalorder %s2205_s2, %s1816_s1  ;;  %p1820_p11 = scmp.lt.u32.totalorder %s1816_s1, %s2205_s2 }
  0x3b   :  { %p1822_p12 = pnand %p1820_p11, %p1817_p10 }
  0x3d   :  { %1825 = shalt.err (!%p1822_p12)
}
  0x3e   :  { %s1826_s0 = scalar_lea.vmem %s48_s25, 1024  ;;  %p1831_p0 = scmp.lt.s32.totalorder %s48_s25, %s48_s25 }
  0x3f   :  { %p1827_p13 = scmp.ne.s32.totalorder %s48_s25, %s1826_s0  ;;  %p1832_p1 = scmp.lt.s32.totalorder %s1826_s0, %s1826_s0 }
  0x41   :  { %p1833_p2 = por %p1832_p1, %p1831_p0 }
  0x43   :  { %p1834_p3 = pnand %p1833_p2, %p1827_p13 }
  0x45   :  { %1837 = shalt.err (!%p1834_p3)
}
  0x46   :  { %53 = dma.hbm_to_vmem [thread:$0]  %s2205_s2, 1024, %s48_s25, [#allocation6], %s1919_s28, %s1919_s28, %s1920_s9  }
  0x47   :  { %s1838_s19 = scalar_lea.hbm %s2208_s5, 1024 }
  0x48   :  { %p1839_p4 = scmp.ne.s32.totalorder %s2208_s5, %s1838_s19  ;;  %p1842_p5 = scmp.lt.u32.totalorder %s1838_s19, %s2208_s5 }
  0x4a   :  { %p1844_p6 = pnand %p1842_p5, %p1839_p4 }
  0x4c   :  { %1847 = shalt.err (!%p1844_p6)
}
  0x4d   :  { %s1848_s24 = scalar_lea.vmem %s74_s27, 1024  ;;  %p1853_p8 = scmp.lt.s32.totalorder %s74_s27, %s74_s27 }
  0x4e   :  { %p1849_p7 = scmp.ne.s32.totalorder %s74_s27, %s1848_s24  ;;  %p1854_p9 = scmp.lt.s32.totalorder %s1848_s24, %s1848_s24 }
  0x50   :  { %p1855_p10 = por %p1854_p9, %p1853_p8 }
  0x52   :  { %p1856_p11 = pnand %p1855_p10, %p1849_p7 }
  0x54   :  { %1859 = shalt.err (!%p1856_p11)
}
  0x55   :  { %79 = dma.hbm_to_vmem [thread:$0]  %s2208_s5, 1024, %s74_s27, [#allocation9], %s1919_s28, %s1919_s28, %s1920_s9  }
  0x56   :  { %s1923_s26 = smov [#allocation11]   ;;  %s1860_s10 = scalar_lea.hbm %s2209_s6, 1024 }
  0x57   :  { %s85_s29 = sshll.u32 %s1923_s26, 4  ;;  %p1861_p12 = scmp.ne.s32.totalorder %s2209_s6, %s1860_s10  ;;  %s86_s29 = int_to_ptr.vmem [resolvable:$true] %s85_s29 }
  0x58   :  { %p1864_p13 = scmp.lt.u32.totalorder %s1860_s10, %s2209_s6 }
  0x5a   :  { %p1866_p0 = pnand %p1864_p13, %p1861_p12 }
  0x5c   :  { %1869 = shalt.err (!%p1866_p0)
}
  0x5d   :  { %s1870_s22 = scalar_lea.vmem %s86_s29, 1024  ;;  %p1875_p2 = scmp.lt.s32.totalorder %s86_s29, %s86_s29 }
  0x5e   :  { %p1871_p1 = scmp.ne.s32.totalorder %s86_s29, %s1870_s22  ;;  %p1876_p3 = scmp.lt.s32.totalorder %s1870_s22, %s1870_s22 }
  0x60   :  { %p1877_p4 = por %p1876_p3, %p1875_p2 }
  0x62   :  { %p1878_p5 = pnand %p1877_p4, %p1871_p1 }
  0x64   :  { %1881 = shalt.err (!%p1878_p5)
}
  0x65   :  { %91 = dma.hbm_to_vmem [thread:$0]  %s2209_s6, 1024, %s86_s29, [#allocation12], %s1919_s28, %s1919_s28, %s1920_s9  }
  0x66   :  { %1904 = dma.done.wait [#allocation3], 1024  }
  0x67   :  { %1905 = vsyncadd [#allocation3], 4294966272 }
  0x68   :  { %1906 = dma.done.wait [#allocation6], 3072  }
  0x69   :  { %1907 = vsyncadd [#allocation6], 4294964224 }
  0x6a   :  { %1908 = dma.done.wait [#allocation9], 2048  }
  0x6b   :  { %1909 = vsyncadd [#allocation9], 4294965248 }
  0x6c   :  { %1910 = dma.done.wait [#allocation12], 1024  }
  0x6d   :  { %1911 = vsyncadd [#allocation12], 4294966272  ;;  %v129_v0 = vld [vmem:[#allocation5] sm:$0xff]  ;;  %v130_v1 = vld [vmem:[#allocation5 + $0x8] sm:$0xff] }
  0x6e   :  { %v131_v2 = vld [vmem:[#allocation5 + $0x10] sm:$0xff]  ;;  %v2060_v3 = vpack.c.bf16 %v130_v1, %v129_v0  ;;  %v132_v4 = vld [vmem:[#allocation5 + $0x18] sm:$0xff]  ;;  %v133_v6 = vld [vmem:[#allocation5 + $0x20] sm:$0xff] }
  0x6f   :  { %v2062_v5 = vpack.c.bf16 %v132_v4, %v131_v2  ;;  %v134_v7 = vld [vmem:[#allocation5 + $0x28] sm:$0xff]  ;;  %v135_v8 = vld [vmem:[#allocation5 + $0x30] sm:$0xff]  ;;  %v136_v10 = vld [vmem:[#allocation5 + $0x38] sm:$0xff] }
  0x70   :  { %1411 = vmatprep.subr.bf16.mxu1 %v2060_v3  ;;  %v2067_v9 = vpack.c.bf16 %v134_v7, %v133_v6  ;;  %v2069_v11 = vld [vmem:[#allocation2] sm:$0xff]   ;;  %v2074_v12 = vpack.c.bf16 %v136_v10, %v135_v8  ;;  %v138_v14 = vld [vmem:[#allocation5 + $0x48] sm:$0xff]  ;;  %v139_v16 = vld [vmem:[#allocation5 + $0x50] sm:$0xff] }
  0x71   :  { %1412 = vmatpush3.bf16.msra.mxu1 %v2060_v3  ;;  %1427 = vmatprep.mubr.bf16.mxu1 %v2069_v11  ;;  %v137_v13 = vld [vmem:[#allocation5 + $0x40] sm:$0xff]  ;;  %v140_v17 = vld [vmem:[#allocation5 + $0x58] sm:$0xff]  ;;  %v142_v20 = vld [vmem:[#allocation5 + $0x68] sm:$0xff] }
  0x72   :  { %1413 = vmatprep.subr.bf16.mxu1 %v2062_v5  ;;  %v2078_v15 = vpack.c.bf16 %v138_v14, %v137_v13  ;;  %v2082_v18 = vpack.c.bf16 %v140_v17, %v139_v16  ;;  %v141_v19 = vld [vmem:[#allocation5 + $0x60] sm:$0xff]  ;;  %v143_v21 = vld [vmem:[#allocation5 + $0x70] sm:$0xff]  ;;  %v144_v22 = vld [vmem:[#allocation5 + $0x78] sm:$0xff] }
  0x73   :  { %v2086_v23 = vpack.c.bf16 %v142_v20, %v141_v19  ;;  %v2090_v24 = vpack.c.bf16 %v144_v22, %v143_v21  ;;  %v1654_v25 = vld [vmem:[#allocation8] sm:$0xff]   ;;  %v2094_v26 = vld [vmem:[#allocation2 + $0x8] sm:$0xff]   ;;  %v2096_v27 = vld [vmem:[#allocation2 + $0x10] sm:$0xff]  }
  0x74   :  { %v1655_v28 = vld [vmem:[#allocation8 + $0x8] sm:$0xff]   ;;  %v1656_v29 = vld [vmem:[#allocation8 + $0x10] sm:$0xff]   ;;  %v2101_v30 = vld [vmem:[#allocation2 + $0x18] sm:$0xff]  }
  0x75   :  { %1414 = vmatpush3.bf16.msra.mxu1 %v2062_v5  ;;  %v2103_v31 = vld [vmem:[#allocation2 + $0x20] sm:$0xff]   ;;  %v1657_v32 = vld [vmem:[#allocation8 + $0x18] sm:$0xff]   ;;  %v2107_v34 = vld [vmem:[#allocation2 + $0x28] sm:$0xff]  }
  0x76   :  { %1415 = vmatprep.subr.bf16.mxu1 %v2067_v9  ;;  %v1658_v33 = vld [vmem:[#allocation8 + $0x20] sm:$0xff]   ;;  %v2109_v35 = vld [vmem:[#allocation2 + $0x30] sm:$0xff]   ;;  %v1659_v36 = vld [vmem:[#allocation8 + $0x28] sm:$0xff]  }
  0x77   :  { %v1660_v37 = vld [vmem:[#allocation8 + $0x30] sm:$0xff]   ;;  %v2113_v38 = vld [vmem:[#allocation2 + $0x38] sm:$0xff]   ;;  %v1662_v40 = vld [vmem:[#allocation7] sm:$0xff]  }
  0x78   :  { %v1661_v39 = vld [vmem:[#allocation8 + $0x38] sm:$0xff]   ;;  %v1670_v41 = vld [vmem:[#allocation11] sm:$0xff]   ;;  %v1671_v42 = vld [vmem:[#allocation11 + $0x8] sm:$0xff]  }
  0x79   :  { %1416 = vmatpush3.bf16.msra.mxu1 %v2067_v9  ;;  %1507 = vmatprep.subr.bf16.mxu0 %v1670_v41  ;;  %v1672_v43 = vld [vmem:[#allocation11 + $0x10] sm:$0xff]   ;;  %v1673_v44 = vld [vmem:[#allocation11 + $0x18] sm:$0xff]   ;;  %v1674_v45 = vld [vmem:[#allocation11 + $0x20] sm:$0xff]  }
  0x7a   :  { %1417 = vmatprep.subr.bf16.mxu1 %v2074_v12  ;;  %1508 = vmatpush3.bf16.msra.mxu0 %v1670_v41  ;;  %v1675_v46 = vld [vmem:[#allocation11 + $0x28] sm:$0xff]   ;;  %v1664_v56 = vld [vmem:[#allocation7 + $0x10] sm:$0xff]   ;;  %v1665_v61 = vld [vmem:[#allocation7 + $0x18] sm:$0xff]  }
  0x7b   :  { %1509 = vmatprep.subr.bf16.mxu0 %v1671_v42  ;;  %v1663_v53 = vld [vmem:[#allocation7 + $0x8] sm:$0xff]   ;;  %v1666_v0 = vld [vmem:[#allocation7 + $0x20] sm:$0xff]   ;;  %v1668_v13 = vld [vmem:[#allocation7 + $0x30] sm:$0xff]  }
  0x7c   :  { %v1667_v7 = vld [vmem:[#allocation7 + $0x28] sm:$0xff]   ;;  %v1669_v20 = vld [vmem:[#allocation7 + $0x38] sm:$0xff]   ;;  %v1676_v21 = vld [vmem:[#allocation11 + $0x30] sm:$0xff]  }
  0x7d   :  { %1418 = vmatpush3.bf16.msra.mxu1 %v2074_v12 }
  0x7e   :  { %1419 = vmatprep.subr.bf16.mxu1 %v2078_v15  ;;  %1510 = vmatpush3.bf16.msra.mxu0 %v1671_v42 }
  0x7f   :  { %1511 = vmatprep.subr.bf16.mxu0 %v1672_v43 }
  0x81   :  { %1420 = vmatpush3.bf16.msra.mxu1 %v2078_v15 }
  0x82   :  { %1421 = vmatprep.subr.bf16.mxu1 %v2082_v18  ;;  %1512 = vmatpush3.bf16.msra.mxu0 %v1672_v43 }
  0x83   :  { %1513 = vmatprep.subr.bf16.mxu0 %v1673_v44 }
  0x85   :  { %1422 = vmatpush3.bf16.msra.mxu1 %v2082_v18 }
  0x86   :  { %1423 = vmatprep.subr.bf16.mxu1 %v2086_v23  ;;  %1514 = vmatpush3.bf16.msra.mxu0 %v1673_v44 }
  0x87   :  { %1515 = vmatprep.subr.bf16.mxu0 %v1674_v45 }
  0x89   :  { %1424 = vmatpush3.bf16.msra.mxu1 %v2086_v23 }
  0x8a   :  { %1425 = vmatprep.subr.bf16.mxu1 %v2090_v24  ;;  %1516 = vmatpush3.bf16.msra.mxu0 %v1674_v45 }
  0x8b   :  { %1517 = vmatprep.subr.bf16.mxu0 %v1675_v46 }
  0x8d   :  { %1426 = vmatpush3.bf16.msra.mxu1 %v2090_v24 }
  0x8e   :  { %1443 = vmatprep.subr.bf16.mxu1 %v1654_v25  ;;  %1518 = vmatpush3.bf16.msra.mxu0 %v1675_v46 }
  0x8f   :  { %1519 = vmatprep.subr.bf16.mxu0 %v1676_v21 }
  0x90   :  { %1428 = vmatmul.mubr.bf16.vlgmr.msra.gmra.mrb[0].mxu1 %v2094_v26 }
  0x91   :  { %1431 = vmatprep.mubr.bf16.mxu1 %v2096_v27  ;;  %1444 = vmatpush3.bf16.msra.mxu1 %v1654_v25 }
  0x92   :  { %1445 = vmatprep.subr.bf16.mxu1 %v1655_v28  ;;  %1520 = vmatpush3.bf16.msra.mxu0 %v1676_v21 }
  0x95   :  { %1446 = vmatpush3.bf16.msra.mxu1 %v1655_v28 }
  0x96   :  { %1447 = vmatprep.subr.bf16.mxu1 %v1656_v29 }
  0x98   :  { %1432 = vmatmul.mubr.bf16.gmra.mrb[4].mxu1 %v2101_v30 }
  0x99   :  { %1435 = vmatprep.mubr.bf16.mxu1 %v2103_v31  ;;  %1448 = vmatpush3.bf16.msra.mxu1 %v1656_v29 }
  0x9a   :  { %1449 = vmatprep.subr.bf16.mxu1 %v1657_v32 }
  0x9d   :  { %1450 = vmatpush3.bf16.msra.mxu1 %v1657_v32 }
  0x9e   :  { %1451 = vmatprep.subr.bf16.mxu1 %v1658_v33 }
  0xa0   :  { %1436 = vmatmul.mubr.bf16.gmra.mrb[8].mxu1 %v2107_v34 }
  0xa1   :  { %1439 = vmatprep.mubr.bf16.mxu1 %v2109_v35  ;;  %1452 = vmatpush3.bf16.msra.mxu1 %v1658_v33 }
  0xa2   :  { %1453 = vmatprep.subr.bf16.mxu1 %v1659_v36 }
  0xa5   :  { %1454 = vmatpush3.bf16.msra.mxu1 %v1659_v36 }
  0xa6   :  { %1455 = vmatprep.subr.bf16.mxu1 %v1660_v37 }
  0xa8   :  { %1440 = vmatmul.mubr.bf16.gmra.mrb[12].mxu1 %v2113_v38 }
  0xa9   :  { %1456 = vmatpush3.bf16.msra.mxu1 %v1660_v37 }
  0xaa   :  { %1457 = vmatprep.subr.bf16.mxu1 %v1661_v39 }
  0xad   :  { %1458 = vmatpush3.bf16.msra.mxu1 %v1661_v39 }
  0xae   :  { %1475 = vmatprep.subr.bf16.mxu1 %v1662_v40 }
 0x163   :  { %v1429_v47 = vpop.f32.mrb[0].mxu1 }
 0x164   :  { %v235_v48 = vpop.f32.mrb[1].mxu1 }
 0x165   :  { %v1430_v49 = vpop.f32.mrb[2].mxu1 }
 0x166   :  { %v315_v50 = vpack.c.bf16 %v1430_v49, %v1429_v47  ;;  %v238_v51 = vpop.f32.mrb[3].mxu1 }
 0x167   :  { %v314_v52 = vpack.c.bf16 %v238_v51, %v235_v48 }
 0x169   :  { %1459 = vmatprep.mubr.bf16.mxu1 %v314_v52 }
 0x16a   :  { %1460 = vmatmul.mubr.bf16.vlgmr.msra.gmra.mrb[16].mxu1 %v315_v50 }
 0x16b   :  { %v1433_v54 = vpop.f32.mrb[4].mxu1  ;;  %1476 = vmatpush3.bf16.msra.mxu1 %v1662_v40 }
 0x16c   :  { %v251_v55 = vpop.f32.mrb[5].mxu1  ;;  %1477 = vmatprep.subr.bf16.mxu1 %v1663_v53 }
 0x16d   :  { %v1434_v57 = vpop.f32.mrb[6].mxu1 }
 0x16e   :  { %v317_v58 = vpack.c.bf16 %v1434_v57, %v1433_v54  ;;  %v254_v59 = vpop.f32.mrb[7].mxu1 }
 0x16f   :  { %v316_v60 = vpack.c.bf16 %v254_v59, %v251_v55  ;;  %1478 = vmatpush3.bf16.msra.mxu1 %v1663_v53 }
 0x170   :  { %1479 = vmatprep.subr.bf16.mxu1 %v1664_v56 }
 0x171   :  { %1463 = vmatprep.mubr.bf16.mxu1 %v316_v60 }
 0x172   :  { %1464 = vmatmul.mubr.bf16.gmra.mrb[20].mxu1 %v317_v58 }
 0x173   :  { %v1437_v62 = vpop.f32.mrb[8].mxu1  ;;  %1480 = vmatpush3.bf16.msra.mxu1 %v1664_v56 }
 0x174   :  { %v267_v63 = vpop.f32.mrb[9].mxu1  ;;  %1481 = vmatprep.subr.bf16.mxu1 %v1665_v61 }
 0x175   :  { %v1438_v1 = vpop.f32.mrb[10].mxu1 }
 0x176   :  { %v319_v2 = vpack.c.bf16 %v1438_v1, %v1437_v62  ;;  %v270_v4 = vpop.f32.mrb[11].mxu1 }
 0x177   :  { %v318_v6 = vpack.c.bf16 %v270_v4, %v267_v63  ;;  %1482 = vmatpush3.bf16.msra.mxu1 %v1665_v61 }
 0x178   :  { %1483 = vmatprep.subr.bf16.mxu1 %v1666_v0 }
 0x179   :  { %1467 = vmatprep.mubr.bf16.mxu1 %v318_v6 }
 0x17a   :  { %1468 = vmatmul.mubr.bf16.gmra.mrb[24].mxu1 %v319_v2 }
 0x17b   :  { %v1441_v8 = vpop.f32.mrb[12].mxu1  ;;  %1484 = vmatpush3.bf16.msra.mxu1 %v1666_v0 }
 0x17c   :  { %v283_v10 = vpop.f32.mrb[13].mxu1  ;;  %1485 = vmatprep.subr.bf16.mxu1 %v1667_v7 }
 0x17d   :  { %v1442_v14 = vpop.f32.mrb[14].mxu1 }
 0x17e   :  { %v321_v16 = vpack.c.bf16 %v1442_v14, %v1441_v8  ;;  %v286_v17 = vpop.f32.mrb[15].mxu1 }
 0x17f   :  { %v320_v19 = vpack.c.bf16 %v286_v17, %v283_v10  ;;  %1486 = vmatpush3.bf16.msra.mxu1 %v1667_v7 }
 0x180   :  { %1487 = vmatprep.subr.bf16.mxu1 %v1668_v13 }
 0x181   :  { %1471 = vmatprep.mubr.bf16.mxu1 %v320_v19 }
 0x182   :  { %1472 = vmatmul.mubr.bf16.gmra.mrb[28].mxu1 %v321_v16 }
 0x183   :  { %1488 = vmatpush3.bf16.msra.mxu1 %v1668_v13  ;;  %1491 = vmatprep.mubr.bf16.mxu1 %v2060_v3  ;;  %v1677_v3 = vld [vmem:[#allocation11 + $0x38] sm:$0xff]  }
 0x184   :  { %1489 = vmatprep.subr.bf16.mxu1 %v1669_v20  ;;  %1521 = vmatprep.subr.bf16.mxu0 %v1677_v3 }
 0x185   :  { %1522 = vmatpush3.bf16.msra.mxu0 %v1677_v3 }
 0x187   :  { %1490 = vmatpush3.bf16.msra.mxu1 %v1669_v20 }
 0x18a   :  { %1492 = vmatmul.mubr.bf16.vlgmr.msra.gmra.mrb[16].mxu1 %v2062_v5  ;;  %v1281_v5 = vld [vmem:[%s2207_s4] ss:$0 sm:$0xff] }
 0x18b   :  { %1495 = vmatprep.mubr.bf16.mxu1 %v2067_v9 }
 0x192   :  { %1496 = vmatmul.mubr.bf16.gmra.mrb[20].mxu1 %v2074_v12 }
 0x193   :  { %1499 = vmatprep.mubr.bf16.mxu1 %v2078_v15 }
 0x19a   :  { %1500 = vmatmul.mubr.bf16.gmra.mrb[24].mxu1 %v2082_v18 }
 0x19b   :  { %1503 = vmatprep.mubr.bf16.mxu1 %v2086_v23 }
 0x1a2   :  { %1504 = vmatmul.mubr.bf16.gmra.mrb[28].mxu1 %v2090_v24 }
 0x25d   :  { %v1493_v9 = vpop.f32.mrb[16].mxu1 }
 0x25e   :  { %v637_v12 = vadd.f32 %v1493_v9, %v1281_v5  ;;  %v565_v22 = vpop.f32.mrb[17].mxu1 }
 0x25f   :  { %v635_v15 = vadd.f32 %v1281_v5, %v565_v22  ;;  %v1494_v25 = vpop.f32.mrb[18].mxu1 }
 0x260   :  { %v638_v18 = vadd.f32 %v1494_v25, %v1281_v5  ;;  %v568_v28 = vpop.f32.mrb[19].mxu1  ;;  %v653_v29 = vmax.f32 %v637_v12, 0.0 }
 0x261   :  { %v636_v23 = vadd.f32 %v1281_v5, %v568_v28  ;;  %v651_v32 = vmax.f32 %v635_v15, 0.0 }
 0x262   :  { %v654_v24 = vmax.f32 %v638_v18, 0.0 }
 0x263   :  { %v652_v33 = vmax.f32 %v636_v23, 0.0 }
 0x264   :  { %v2127_v36 = vpack.c.bf16 %v654_v24, %v653_v29 }
 0x265   :  { %v1497_v37 = vpop.f32.mrb[20].mxu1  ;;  %v2129_v39 = vpack.c.bf16 %v652_v33, %v651_v32 }
 0x266   :  { %v641_v40 = vadd.f32 %v1497_v37, %v1281_v5  ;;  %v581_v41 = vpop.f32.mrb[21].mxu1 }
 0x267   :  { %v639_v42 = vadd.f32 %v1281_v5, %v581_v41  ;;  %v1498_v43 = vpop.f32.mrb[22].mxu1  ;;  %1523 = vmatprep.mubr.bf16.mxu0 %v2129_v39 }
 0x268   :  { %v642_v44 = vadd.f32 %v1498_v43, %v1281_v5  ;;  %v584_v45 = vpop.f32.mrb[23].mxu1  ;;  %1524 = vmatmul.mubr.bf16.vlgmr.msra.gmra.mrb[0].mxu0 %v2127_v36  ;;  %v657_v47 = vmax.f32 %v641_v40, 0.0 }
 0x269   :  { %v640_v46 = vadd.f32 %v1281_v5, %v584_v45  ;;  %v655_v49 = vmax.f32 %v639_v42, 0.0 }
 0x26a   :  { %v658_v48 = vmax.f32 %v642_v44, 0.0 }
 0x26b   :  { %v656_v50 = vmax.f32 %v640_v46, 0.0 }
 0x26c   :  { %v2133_v51 = vpack.c.bf16 %v658_v48, %v657_v47 }
 0x26d   :  { %v2135_v52 = vpack.c.bf16 %v656_v50, %v655_v49  ;;  %v1501_v53 = vpop.f32.mrb[24].mxu1  ;;  %v1678_v50 = vld [vmem:[#allocation10] sm:$0xff]  }
 0x26e   :  { %v645_v54 = vadd.f32 %v1501_v53, %v1281_v5  ;;  %v597_v55 = vpop.f32.mrb[25].mxu1  ;;  %v1679_v53 = vld [vmem:[#allocation10 + $0x8] sm:$0xff]  }
 0x26f   :  { %v643_v56 = vadd.f32 %v1281_v5, %v597_v55  ;;  %v1502_v57 = vpop.f32.mrb[26].mxu1  ;;  %1527 = vmatprep.mubr.bf16.mxu0 %v2135_v52  ;;  %v1681_v55 = vld [vmem:[#allocation10 + $0x18] sm:$0xff]  }
 0x270   :  { %v646_v58 = vadd.f32 %v1502_v57, %v1281_v5  ;;  %v600_v59 = vpop.f32.mrb[27].mxu1  ;;  %1528 = vmatmul.mubr.bf16.gmra.mrb[4].mxu0 %v2133_v51  ;;  %v661_v61 = vmax.f32 %v645_v54, 0.0  ;;  %v1680_v54 = vld [vmem:[#allocation10 + $0x10] sm:$0xff]   ;;  %v1683_v57 = vld [vmem:[#allocation10 + $0x28] sm:$0xff]  }
 0x271   :  { %v644_v60 = vadd.f32 %v1281_v5, %v600_v59  ;;  %v659_v63 = vmax.f32 %v643_v56, 0.0  ;;  %v1682_v56 = vld [vmem:[#allocation10 + $0x20] sm:$0xff]  }
 0x272   :  { %v662_v62 = vmax.f32 %v646_v58, 0.0 }
 0x273   :  { %v660_v0 = vmax.f32 %v644_v60, 0.0 }
 0x274   :  { %v2139_v1 = vpack.c.bf16 %v662_v62, %v661_v61 }
 0x275   :  { %v2141_v2 = vpack.c.bf16 %v660_v0, %v659_v63  ;;  %v1505_v4 = vpop.f32.mrb[28].mxu1 }
 0x276   :  { %v649_v6 = vadd.f32 %v1505_v4, %v1281_v5  ;;  %v613_v7 = vpop.f32.mrb[29].mxu1 }
 0x277   :  { %v647_v8 = vadd.f32 %v1281_v5, %v613_v7  ;;  %v1506_v10 = vpop.f32.mrb[30].mxu1  ;;  %1531 = vmatprep.mubr.bf16.mxu0 %v2141_v2 }
 0x278   :  { %v650_v13 = vadd.f32 %v1506_v10, %v1281_v5  ;;  %v616_v14 = vpop.f32.mrb[31].mxu1  ;;  %1532 = vmatmul.mubr.bf16.gmra.mrb[8].mxu0 %v2139_v1  ;;  %v665_v17 = vmax.f32 %v649_v6, 0.0 }
 0x279   :  { %v648_v16 = vadd.f32 %v1281_v5, %v616_v14  ;;  %v663_v20 = vmax.f32 %v647_v8, 0.0 }
 0x27a   :  { %v666_v19 = vmax.f32 %v650_v13, 0.0 }
 0x27b   :  { %v664_v21 = vmax.f32 %v648_v16, 0.0 }
 0x27c   :  { %v2145_v3 = vpack.c.bf16 %v666_v19, %v665_v17 }
 0x27d   :  { %v2147_v9 = vpack.c.bf16 %v664_v21, %v663_v20 }
 0x27f   :  { %1535 = vmatprep.mubr.bf16.mxu0 %v2147_v9 }
 0x280   :  { %1536 = vmatmul.mubr.bf16.gmra.mrb[12].mxu0 %v2145_v3 }
 0x281   :  { %1555 = vmatprep.mubr.bf16.mxu0 %v2069_v11 }
 0x33b   :  { %v1525_v12 = vpop.f32.mrb[0].mxu0 }
 0x33c   :  { %v773_v22 = vpop.f32.mrb[1].mxu0 }
 0x33d   :  { %v1526_v15 = vpop.f32.mrb[2].mxu0 }
 0x33e   :  { %v853_v25 = vpack.c.bf16 %v1526_v15, %v1525_v12  ;;  %v776_v18 = vpop.f32.mrb[3].mxu0 }
 0x33f   :  { %v852_v5 = vpack.c.bf16 %v776_v18, %v773_v22 }
 0x341   :  { %1539 = vmatprep.subr.bf16.mxu0 %v852_v5 }
 0x342   :  { %1540 = vmatpush3.bf16.msra.mxu0 %v852_v5 }
 0x343   :  { %v1529_v28 = vpop.f32.mrb[4].mxu0  ;;  %1541 = vmatprep.subr.bf16.mxu0 %v853_v25 }
 0x344   :  { %v789_v23 = vpop.f32.mrb[5].mxu0 }
 0x345   :  { %v1530_v29 = vpop.f32.mrb[6].mxu0 }
 0x346   :  { %v855_v24 = vpack.c.bf16 %v1530_v29, %v1529_v28  ;;  %v792_v32 = vpop.f32.mrb[7].mxu0  ;;  %1542 = vmatpush3.bf16.msra.mxu0 %v853_v25 }
 0x347   :  { %v854_v33 = vpack.c.bf16 %v792_v32, %v789_v23 }
 0x349   :  { %1543 = vmatprep.subr.bf16.mxu0 %v854_v33 }
 0x34a   :  { %1544 = vmatpush3.bf16.msra.mxu0 %v854_v33 }
 0x34b   :  { %v1533_v37 = vpop.f32.mrb[8].mxu0  ;;  %1545 = vmatprep.subr.bf16.mxu0 %v855_v24 }
 0x34c   :  { %v805_v11 = vpop.f32.mrb[9].mxu0 }
 0x34d   :  { %v1534_v40 = vpop.f32.mrb[10].mxu0 }
 0x34e   :  { %v857_v41 = vpack.c.bf16 %v1534_v40, %v1533_v37  ;;  %v808_v42 = vpop.f32.mrb[11].mxu0  ;;  %1546 = vmatpush3.bf16.msra.mxu0 %v855_v24 }
 0x34f   :  { %v856_v43 = vpack.c.bf16 %v808_v42, %v805_v11 }
 0x351   :  { %1547 = vmatprep.subr.bf16.mxu0 %v856_v43 }
 0x352   :  { %1548 = vmatpush3.bf16.msra.mxu0 %v856_v43 }
 0x353   :  { %v1537_v44 = vpop.f32.mrb[12].mxu0  ;;  %1549 = vmatprep.subr.bf16.mxu0 %v857_v41 }
 0x354   :  { %v821_v45 = vpop.f32.mrb[13].mxu0 }
 0x355   :  { %v1538_v46 = vpop.f32.mrb[14].mxu0 }
 0x356   :  { %v859_v47 = vpack.c.bf16 %v1538_v46, %v1537_v44  ;;  %v824_v48 = vpop.f32.mrb[15].mxu0  ;;  %1550 = vmatpush3.bf16.msra.mxu0 %v857_v41 }
 0x357   :  { %v858_v49 = vpack.c.bf16 %v824_v48, %v821_v45 }
 0x359   :  { %1551 = vmatprep.subr.bf16.mxu0 %v858_v49 }
 0x35a   :  { %1552 = vmatpush3.bf16.msra.mxu0 %v858_v49 }
 0x35b   :  { %1553 = vmatprep.subr.bf16.mxu0 %v859_v47 }
 0x35e   :  { %1554 = vmatpush3.bf16.msra.mxu0 %v859_v47 }
 0x35f   :  { %1571 = vmatprep.subr.bf16.mxu0 %v1678_v50 }
 0x361   :  { %1556 = vmatmul.mubr.bf16.vlgmr.msra.gmra.mrb[16].mxu0 %v2094_v26  ;;  %v1684_v26 = vld [vmem:[#allocation10 + $0x30] sm:$0xff]  }
 0x362   :  { %1572 = vmatpush3.bf16.msra.mxu0 %v1678_v50  ;;  %1559 = vmatprep.mubr.bf16.mxu0 %v2096_v27  ;;  %v1685_v27 = vld [vmem:[#allocation10 + $0x38] sm:$0xff]  }
 0x363   :  { %1573 = vmatprep.subr.bf16.mxu0 %v1679_v53 }
 0x366   :  { %1574 = vmatpush3.bf16.msra.mxu0 %v1679_v53 }
 0x367   :  { %1575 = vmatprep.subr.bf16.mxu0 %v1680_v54 }
 0x369   :  { %1560 = vmatmul.mubr.bf16.gmra.mrb[20].mxu0 %v2101_v30  ;;  %v2170_v30 = vld [vmem:[%s2210_s7] ss:$0 sm:$0xff]  ;;  %s1924_s7 = smov [#allocation13]  }
 0x36a   :  { %1576 = vmatpush3.bf16.msra.mxu0 %v1680_v54  ;;  %1563 = vmatprep.mubr.bf16.mxu0 %v2103_v31  ;;  %s1242_s14 = sshll.u32 %s1924_s7, 4  ;;  %s1243_s14 = int_to_ptr.vmem [resolvable:$true] %s1242_s14 }
 0x36b   :  { %1577 = vmatprep.subr.bf16.mxu0 %v1681_v55  ;;  %s1882_s17 = scalar_lea.vmem %s1243_s14, 2048  ;;  %p1887_p7 = scmp.lt.s32.totalorder %s1243_s14, %s1243_s14 }
 0x36c   :  { %p1883_p6 = scmp.ne.s32.totalorder %s1243_s14, %s1882_s17  ;;  %p1888_p8 = scmp.lt.s32.totalorder %s1882_s17, %s1882_s17 }
 0x36e   :  { %1578 = vmatpush3.bf16.msra.mxu0 %v1681_v55  ;;  %p1889_p9 = por %p1888_p8, %p1887_p7 }
 0x36f   :  { %1579 = vmatprep.subr.bf16.mxu0 %v1682_v56 }
 0x370   :  { %p1890_p10 = pnand %p1889_p9, %p1883_p6 }
 0x371   :  { %1564 = vmatmul.mubr.bf16.gmra.mrb[24].mxu0 %v2107_v34 }
 0x372   :  { %1580 = vmatpush3.bf16.msra.mxu0 %v1682_v56  ;;  %1567 = vmatprep.mubr.bf16.mxu0 %v2109_v35 }
 0x373   :  { %1581 = vmatprep.subr.bf16.mxu0 %v1683_v57 }
 0x376   :  { %1582 = vmatpush3.bf16.msra.mxu0 %v1683_v57 }
 0x377   :  { %1583 = vmatprep.subr.bf16.mxu0 %v1684_v26 }
 0x379   :  { %1568 = vmatmul.mubr.bf16.gmra.mrb[28].mxu0 %v2113_v38 }
 0x37a   :  { %1584 = vmatpush3.bf16.msra.mxu0 %v1684_v26  ;;  %1587 = vmatprep.mubr.bf16.mxu0 %v2129_v39 }
 0x37b   :  { %1585 = vmatprep.subr.bf16.mxu0 %v1685_v27 }
 0x37e   :  { %1586 = vmatpush3.bf16.msra.mxu0 %v1685_v27 }
 0x381   :  { %1588 = vmatmul.mubr.bf16.vlgmr.msra.gmra.mrb[16].mxu0 %v2127_v36 }
 0x382   :  { %1591 = vmatprep.mubr.bf16.mxu0 %v2135_v52 }
 0x389   :  { %1592 = vmatmul.mubr.bf16.gmra.mrb[20].mxu0 %v2133_v51 }
 0x38a   :  { %1595 = vmatprep.mubr.bf16.mxu0 %v2141_v2 }
 0x391   :  { %1596 = vmatmul.mubr.bf16.gmra.mrb[24].mxu0 %v2139_v1 }
 0x392   :  { %1599 = vmatprep.mubr.bf16.mxu0 %v2147_v9 }
 0x399   :  { %1600 = vmatmul.mubr.bf16.gmra.mrb[28].mxu0 %v2145_v3 }
 0x454   :  { %v1589_v31 = vpop.f32.mrb[16].mxu0 }
 0x455   :  { %v1111_v34 = vadd.f32 %v1589_v31, %v2170_v30  ;;  %v1039_v35 = vpop.f32.mrb[17].mxu0 }
 0x456   :  { %v1109_v38 = vadd.f32 %v2170_v30, %v1039_v35  ;;  %v1590_v36 = vpop.f32.mrb[18].mxu0 }
 0x457   :  { %v1301_v39 = vmul.f32 -1.442695, %v1111_v34  ;;  %v1112_v51 = vadd.f32 %v1590_v36, %v2170_v30  ;;  %v1042_v52 = vpop.f32.mrb[19].mxu0 }
 0x458   :  { %v1299_v58 = vmul.f32 -1.442695, %v1109_v38  ;;  %v1110_v59 = vadd.f32 %v2170_v30, %v1042_v52 }
 0x459   :  { %1686 = vpow2.f32 %v1301_v39  ;;  %v1302_v60 = vmul.f32 -1.442695, %v1112_v51 }
 0x45a   :  { %1688 = vpow2.f32 %v1299_v58  ;;  %v1300_v61 = vmul.f32 -1.442695, %v1110_v59 }
 0x45b   :  { %1690 = vpow2.f32 %v1302_v60 }
 0x45c   :  { %1692 = vpow2.f32 %v1300_v61  ;;  %v1593_v62 = vpop.f32.mrb[20].mxu0 }
 0x45d   :  { %v1115_v63 = vadd.f32 %v1593_v62, %v2170_v30  ;;  %v1055_v0 = vpop.f32.mrb[21].mxu0 }
 0x45e   :  { %v1113_v1 = vadd.f32 %v2170_v30, %v1055_v0  ;;  %v1594_v2 = vpop.f32.mrb[22].mxu0 }
 0x45f   :  { %v1305_v4 = vmul.f32 -1.442695, %v1115_v63  ;;  %v1116_v6 = vadd.f32 %v1594_v2, %v2170_v30  ;;  %v1058_v7 = vpop.f32.mrb[23].mxu0 }
 0x460   :  { %v1303_v8 = vmul.f32 -1.442695, %v1113_v1  ;;  %v1114_v10 = vadd.f32 %v2170_v30, %v1058_v7 }
 0x461   :  { %1694 = vpow2.f32 %v1305_v4  ;;  %v1306_v13 = vmul.f32 -1.442695, %v1116_v6 }
 0x462   :  { %1696 = vpow2.f32 %v1303_v8  ;;  %v1304_v14 = vmul.f32 -1.442695, %v1114_v10 }
 0x463   :  { %v1687_v16 = vpop.eup %1686  ;;  %1698 = vpow2.f32 %v1306_v13 }
 0x464   :  { %v1689_v17 = vpop.eup %1688  ;;  %v1175_v19 = vadd.f32 1.0, %v1687_v16  ;;  %1700 = vpow2.f32 %v1304_v14  ;;  %v1597_v20 = vpop.f32.mrb[24].mxu0 }
 0x465   :  { %v1691_v21 = vpop.eup %1690  ;;  %v1173_v3 = vadd.f32 1.0, %v1689_v17  ;;  %v1119_v9 = vadd.f32 %v1597_v20, %v2170_v30  ;;  %v1071_v12 = vpop.f32.mrb[25].mxu0 }
 0x466   :  { %v1693_v22 = vpop.eup %1692  ;;  %1702 = vrcp.f32 %v1175_v19  ;;  %v1176_v15 = vadd.f32 1.0, %v1691_v21  ;;  %v1117_v25 = vadd.f32 %v2170_v30, %v1071_v12  ;;  %v1598_v18 = vpop.f32.mrb[26].mxu0 }
 0x467   :  { %1704 = vrcp.f32 %v1173_v3  ;;  %v1174_v5 = vadd.f32 1.0, %v1693_v22  ;;  %v1309_v28 = vmul.f32 -1.442695, %v1119_v9  ;;  %v1120_v23 = vadd.f32 %v1598_v18, %v2170_v30  ;;  %v1074_v29 = vpop.f32.mrb[27].mxu0 }
 0x468   :  { %1706 = vrcp.f32 %v1176_v15  ;;  %v1307_v24 = vmul.f32 -1.442695, %v1117_v25  ;;  %v1118_v32 = vadd.f32 %v2170_v30, %v1074_v29 }
 0x469   :  { %1708 = vrcp.f32 %v1174_v5  ;;  %v1310_v33 = vmul.f32 -1.442695, %v1120_v23 }
 0x46a   :  { %1710 = vpow2.f32 %v1309_v28  ;;  %v1308_v37 = vmul.f32 -1.442695, %v1118_v32 }
 0x46b   :  { %v1695_v11 = vpop.eup %1694  ;;  %1712 = vpow2.f32 %v1307_v24 }
 0x46c   :  { %v1697_v40 = vpop.eup %1696  ;;  %v1179_v41 = vadd.f32 1.0, %v1695_v11  ;;  %1714 = vpow2.f32 %v1310_v33  ;;  %v1601_v42 = vpop.f32.mrb[28].mxu0 }
 0x46d   :  { %v1699_v43 = vpop.eup %1698  ;;  %v1177_v44 = vadd.f32 1.0, %v1697_v40  ;;  %1716 = vpow2.f32 %v1308_v37  ;;  %v1123_v45 = vadd.f32 %v1601_v42, %v2170_v30  ;;  %v1087_v46 = vpop.f32.mrb[29].mxu0 }
 0x46e   :  { %v1701_v47 = vpop.eup %1700  ;;  %1718 = vrcp.f32 %v1179_v41  ;;  %v1180_v48 = vadd.f32 1.0, %v1699_v43  ;;  %v1121_v49 = vadd.f32 %v2170_v30, %v1087_v46  ;;  %v1602_v50 = vpop.f32.mrb[30].mxu0 }
 0x46f   :  { %1720 = vrcp.f32 %v1177_v44  ;;  %v1178_v53 = vadd.f32 1.0, %v1701_v47  ;;  %v1313_v54 = vmul.f32 -1.442695, %v1123_v45  ;;  %v1124_v55 = vadd.f32 %v1602_v50, %v2170_v30  ;;  %v1090_v56 = vpop.f32.mrb[31].mxu0 }
 0x470   :  { %v1703_v57 = vpop.eup %1702  ;;  %1722 = vrcp.f32 %v1180_v48  ;;  %v1311_v26 = vmul.f32 -1.442695, %v1121_v49  ;;  %v1122_v27 = vadd.f32 %v2170_v30, %v1090_v56 }
 0x471   :  { %v1705_v31 = vpop.eup %1704  ;;  %1223 = vst [vmem:[#allocation13 + $0x10] sm:$0xff] %v1703_v57  ;;  %1724 = vrcp.f32 %v1178_v53  ;;  %v1314_v34 = vmul.f32 -1.442695, %v1124_v55 }
 0x472   :  { %v1707_v35 = vpop.eup %1706  ;;  %1221 = vst [vmem:[#allocation13] sm:$0xff] %v1705_v31  ;;  %1726 = vpow2.f32 %v1313_v54  ;;  %v1312_v38 = vmul.f32 -1.442695, %v1122_v27 }
 0x473   :  { %v1709_v36 = vpop.eup %1708  ;;  %1224 = vst [vmem:[#allocation13 + $0x18] sm:$0xff] %v1707_v35  ;;  %1728 = vpow2.f32 %v1311_v26 }
 0x474   :  { %v1711_v39 = vpop.eup %1710  ;;  %1222 = vst [vmem:[#allocation13 + $0x8] sm:$0xff] %v1709_v36  ;;  %1730 = vpow2.f32 %v1314_v34 }
 0x475   :  { %v1713_v51 = vpop.eup %1712  ;;  %v1183_v52 = vadd.f32 1.0, %v1711_v39  ;;  %1732 = vpow2.f32 %v1312_v38 }
 0x476   :  { %v1715_v58 = vpop.eup %1714  ;;  %v1181_v59 = vadd.f32 1.0, %v1713_v51 }
 0x477   :  { %v1717_v30 = vpop.eup %1716  ;;  %1734 = vrcp.f32 %v1183_v52  ;;  %v1184_v60 = vadd.f32 1.0, %v1715_v58 }
 0x478   :  { %v1719_v61 = vpop.eup %1718  ;;  %1736 = vrcp.f32 %v1181_v59  ;;  %v1182_v62 = vadd.f32 1.0, %v1717_v30 }
 0x479   :  { %v1721_v63 = vpop.eup %1720  ;;  %1227 = vst [vmem:[#allocation13 + $0x30] sm:$0xff] %v1719_v61  ;;  %1738 = vrcp.f32 %v1184_v60 }
 0x47a   :  { %v1723_v0 = vpop.eup %1722  ;;  %1225 = vst [vmem:[#allocation13 + $0x20] sm:$0xff] %v1721_v63  ;;  %1740 = vrcp.f32 %v1182_v62 }
 0x47b   :  { %v1725_v1 = vpop.eup %1724  ;;  %1228 = vst [vmem:[#allocation13 + $0x38] sm:$0xff] %v1723_v0 }
 0x47c   :  { %v1727_v2 = vpop.eup %1726  ;;  %1226 = vst [vmem:[#allocation13 + $0x28] sm:$0xff] %v1725_v1 }
 0x47d   :  { %v1729_v4 = vpop.eup %1728  ;;  %v1187_v6 = vadd.f32 1.0, %v1727_v2 }
 0x47e   :  { %v1731_v7 = vpop.eup %1730  ;;  %v1185_v8 = vadd.f32 1.0, %v1729_v4 }
 0x47f   :  { %v1733_v10 = vpop.eup %1732  ;;  %1742 = vrcp.f32 %v1187_v6  ;;  %v1188_v13 = vadd.f32 1.0, %v1731_v7 }
 0x480   :  { %1744 = vrcp.f32 %v1185_v8  ;;  %v1186_v14 = vadd.f32 1.0, %v1733_v10 }
 0x481   :  { %v1735_v16 = vpop.eup %1734  ;;  %1746 = vrcp.f32 %v1188_v13 }
 0x482   :  { %v1737_v17 = vpop.eup %1736  ;;  %1231 = vst [vmem:[#allocation13 + $0x50] sm:$0xff] %v1735_v16  ;;  %1748 = vrcp.f32 %v1186_v14 }
 0x483   :  { %v1739_v19 = vpop.eup %1738  ;;  %1229 = vst [vmem:[#allocation13 + $0x40] sm:$0xff] %v1737_v17 }
 0x484   :  { %v1741_v20 = vpop.eup %1740  ;;  %1232 = vst [vmem:[#allocation13 + $0x58] sm:$0xff] %v1739_v19 }
 0x485   :  { %1230 = vst [vmem:[#allocation13 + $0x48] sm:$0xff] %v1741_v20 }
 0x489   :  { %v1743_v21 = vpop.eup %1742 }
 0x48a   :  { %v1745_v3 = vpop.eup %1744  ;;  %1235 = vst [vmem:[#allocation13 + $0x70] sm:$0xff] %v1743_v21 }
 0x48b   :  { %v1747_v9 = vpop.eup %1746  ;;  %1233 = vst [vmem:[#allocation13 + $0x60] sm:$0xff] %v1745_v3 }
 0x48c   :  { %v1749_v12 = vpop.eup %1748  ;;  %1236 = vst [vmem:[#allocation13 + $0x78] sm:$0xff] %v1747_v9 }
 0x48d   :  { %1234 = vst [vmem:[#allocation13 + $0x68] sm:$0xff] %v1749_v12 }
 0x48e   :  { %1893 = shalt.err (!%p1890_p10)
}
 0x48f   :  { %s1894_s21 = scalar_lea.hbm %s2211_s8, 2048 }
 0x490   :  { %p1895_p11 = scmp.ne.s32.totalorder %s2211_s8, %s1894_s21  ;;  %p1898_p12 = scmp.lt.u32.totalorder %s1894_s21, %s2211_s8 }
 0x492   :  { %p1900_p13 = pnand %p1898_p12, %p1895_p11 }
 0x494   :  { %1903 = shalt.err (!%p1900_p13)
}
 0x495   :  { %1248 = dma.vmem_to_hbm [thread:$0]  %s1243_s14, 2048, %s2211_s8, [#allocation4], %s1915_s15, %s1915_s15, %s1916_s16  }
 0x496   :  { %1912 = dma.done.wait [#allocation4], 2048  }
 0x497   :  { %1913 = vsyncadd [#allocation4], 4294965248 }
 0x498   :  { %1252 = vsyncpa [#allocation3], 1 }
 0x499   :  { %1253 = vsyncpa [#allocation6], 1 }
 0x49a   :  { %1254 = vsyncpa [#allocation9], 1 }
 0x49b   :  { %1255 = vsyncpa [#allocation12], 1 }
 0x49c   :  { %1256 = vsyncpa [#allocation4], 1 }

</bundles_post_ra>
